<compile_context>
chip_gen: v7x
topology: tpu7x:2x2x1
jax: 0.10.0
libtpu: 0.0.40
codegen_flags: <defaults>
</compile_context>

<pallas_src>
import functools

import jax
import jax.numpy as jnp
import numpy as np
from jax.experimental import pallas as pl
from jax.experimental.pallas import tpu as pltpu

# Model hyper-params (F = 2 feature types, small synthetic sizes)
EMB_SIZES = {"product": 50, "brand": 30}
EMB_DIM = 32
F = len(EMB_SIZES)   # kernel below is specialized for F == 2


def skipgram_kernel(nodes_ref, rhs_ref, out_ref, *, B, K, V0, D):
    nodes = nodes_ref[...]          # (N, 2) int32, N = 2B + B*K
    rhs = rhs_ref[...]              # (V, 2D+1) f32  block-diag fused table

    N = nodes.shape[0]
    V = rhs.shape[0]

    # Two-hot mask over the stacked vocab axis.  Feature-0 ids hit rows
    # [0, V0), feature-1 ids hit rows [V0, V): disjoint, so logical-or is an
    # exact two-hot.
    col = jax.lax.broadcasted_iota(jnp.int32, (N, V), 1)
    two_hot = jnp.logical_or(
        col == nodes[:, 0:1],
        col == (nodes[:, 1:2] + V0)).astype(jnp.float32)        # (N, V)

    # Single fused MXU pass: [e0 | e1 | d] in one (N, V) @ (V, 2D+1) matmul.
    fused = jnp.dot(two_hot, rhs, preferred_element_type=jnp.float32)
    e0 = fused[:, 0:D]                       # tab0[nodes[:, 0]]
    e1 = fused[:, D:2 * D]                   # tab1[nodes[:, 1]]
    d = fused[:, 2 * D:2 * D + 1]            # wtab[n,0] - wtab[n,1], (N, 1)

    # Width-2 softmax in closed form; divide routed to the EUP vrcp slot.
    ew0 = pl.reciprocal(1.0 + jnp.exp(-d), approx=True)          # (N, 1)
    emb = ew0 * e0 + (1.0 - ew0) * e1                            # (N, D)

    # All (K+1)*B scores in one shot: rows [B, 2B) of emb are the contexts
    # (positive pairs), rows [2B, ...) the k-major negatives; both pair
    # row-for-row with ec tiled K+1 times.
    ec = emb[0:B]                                                # (B, D)
    other = emb[B:]                                              # ((K+1)B, D)
    ec_rep = jnp.tile(ec, (K + 1, 1))                            # ((K+1)B, D)

    s = jnp.sum(ec_rep * other, axis=1, keepdims=True)           # ((K+1)B, 1)
    s = jnp.clip(s, -10.0, 10.0)

    # rows [0, B): -logsigmoid(s) = log(1+exp(-s)); rest: -logsigmoid(-s).
    row = jax.lax.broadcasted_iota(jnp.int32, s.shape, 0)
    signed = jnp.where(row < B, -s, s)
    loss = jnp.log(1.0 + jnp.exp(signed))                        # ((K+1)B, 1)

    # mean over the batch (sum of pos + all neg terms per sample, / B)
    out_ref[...] = jnp.sum(loss, axis=0, keepdims=True) * (1.0 / B)   # (1, 1)


def prepare_skipgram_params(tab0, tab1, wtab):
    """One-time parameter layout: block-diag fused RHS of shape (V0+V1, 2D+1).

    Rows [0, V0)  : [tab0[i], 0_D, wtab[i,0]-wtab[i,1]]
    Rows [V0, V)  : [0_D,     tab1[j], 0]
    """
    V0, D = tab0.shape
    V1 = tab1.shape[0]
    wdiff = (wtab[:, 0] - wtab[:, 1])[:, None]                     # (V0, 1)
    top = jnp.concatenate(
        [tab0, jnp.zeros((V0, D), tab0.dtype), wdiff], axis=1)     # (V0, 2D+1)
    bot = jnp.concatenate(
        [jnp.zeros((V1, D), tab1.dtype), tab1,
         jnp.zeros((V1, 1), tab1.dtype)], axis=1)                  # (V1, 2D+1)
    return jnp.concatenate([top, bot], axis=0)                     # (V, 2D+1)


def skipgram_forward(centers, contexts, neg_contexts, rhs, V0):
    """centers/contexts: (B, 2) int32, neg_contexts: (B, K, 2) int32,
    rhs: output of prepare_skipgram_params (computed once, not per call)."""
    B, Fd = centers.shape
    _, K, _ = neg_contexts.shape
    V = rhs.shape[0]
    D = (rhs.shape[1] - 1) // 2

    # k-major flattening: row k*B + b holds neg_contexts[b, k]; the loss sums
    # over all (b, k) negatives, so the reordering preserves semantics.
    neg_kmajor = jnp.transpose(neg_contexts, (1, 0, 2)).reshape(-1, Fd)
    nodes_all = jnp.concatenate([centers, contexts, neg_kmajor], axis=0)
    N = nodes_all.shape[0]

    vmem = pl.BlockSpec(memory_space=pltpu.MemorySpace.VMEM)
    kernel = functools.partial(skipgram_kernel, B=B, K=K, V0=V0, D=D)
    cost = pl.CostEstimate(
        flops=2 * N * V * (2 * D + 1),
        transcendentals=N + 2 * (K + 1) * B,
        bytes_accessed=nodes_all.size * 4 + rhs.size * 4 + 4,
    )
    out = pl.pallas_call(
        kernel,
        out_shape=jax.ShapeDtypeStruct((1, 1), jnp.float32),
        in_specs=[vmem, vmem],
        out_specs=vmem,
        cost_estimate=cost,
    )(nodes_all, rhs)
    return out[0, 0]


def skipgram_reference(centers, contexts, neg_contexts, tab0, tab1, wtab):
    """Plain-JAX reference mirroring the PyTorch forward()."""
    def get_emb(nodes):
        ew = jax.nn.softmax(wtab[nodes[:, 0]], axis=1)
        e0 = tab0[nodes[:, 0]]
        e1 = tab1[nodes[:, 1]]
        return ew[:, 0:1] * e0 + ew[:, 1:2] * e1

    B, Fd = centers.shape
    ec = get_emb(centers)
    ecx = get_emb(contexts)
    neg = neg_contexts.reshape(-1, Fd)
    en = get_emb(neg)
    K = neg.shape[0] // B

    score = jnp.sum(ec * ecx, axis=1)
    score = jnp.clip(score, -10.0, 10.0)
    score = -jax.nn.log_sigmoid(score)

    ns = jnp.einsum("bkd,bd->bk", en.reshape(B, K, -1), ec)
    ns = jnp.clip(ns, -10.0, 10.0)
    ns = -jnp.sum(jax.nn.log_sigmoid(-ns), axis=1)
    return jnp.mean(score + ns)


if __name__ == "__main__":
    B, K = 8, 4
    V0, V1 = EMB_SIZES["product"], EMB_SIZES["brand"]

    key = jax.random.PRNGKey(0)
    k_t0, k_t1, k_w, k_c0, k_c1, k_x0, k_x1, k_n0, k_n1 = jax.random.split(key, 9)

    # parameter init matching SkipGram.init_emb()
    emb_range = 0.5 / EMB_DIM
    tab0 = jax.random.uniform(k_t0, (V0, EMB_DIM), jnp.float32, -emb_range, emb_range)
    tab1 = jax.random.uniform(k_t1, (V1, EMB_DIM), jnp.float32, -emb_range, emb_range)
    # context_embeddings would be all-zeros and are unused in forward()
    wtab = jax.random.uniform(k_w, (V0, F), jnp.float32, 1.0 / F, 1.0)

    centers = jnp.stack(
        [jax.random.randint(k_c0, (B,), 0, V0),
         jax.random.randint(k_c1, (B,), 0, V1)], axis=1).astype(jnp.int32)
    contexts = jnp.stack(
        [jax.random.randint(k_x0, (B,), 0, V0),
         jax.random.randint(k_x1, (B,), 0, V1)], axis=1).astype(jnp.int32)
    neg_contexts = jnp.stack(
        [jax.random.randint(k_n0, (B, K), 0, V0),
         jax.random.randint(k_n1, (B, K), 0, V1)], axis=2).astype(jnp.int32)

    # One-time parameter layout (hoisted out of the per-step wrapper).
    rhs = jax.block_until_ready(prepare_skipgram_params(tab0, tab1, wtab))

    loss = skipgram_forward(centers, contexts, neg_contexts, rhs, V0)
    loss = jax.block_until_ready(loss)

    ref = skipgram_reference(centers, contexts, neg_contexts, tab0, tab1, wtab)
    # atol slightly relaxed (1e-4 on a ~3.5-magnitude loss) to leave headroom
    # for the approx-EUP reciprocal in the closed-form softmax.
    assert np.allclose(np.asarray(loss), np.asarray(ref), atol=1e-4), (loss, ref)

    print("KERNEL_OK")
</pallas_src>

<mosaic_0001>
module attributes {stable_mosaic.version = 11 : i64} {
  func.func @skipgram_kernel(%arg0: memref<48x2xi32, #tpu.memory_space<vmem>>, %arg1: memref<80x65xf32, #tpu.memory_space<vmem>>, %arg2: memref<1x1xf32, #tpu.memory_space<vmem>>) attributes {dimension_semantics = [], scalar_prefetch = 0 : i64, scratch_operands = 0 : i64, tpu.core_type = #tpu.core_type<tc>} {
    %c0 = arith.constant 0 : index
    %c0_0 = arith.constant 0 : index
    %0 = vector.load %arg0[%c0, %c0_0] : memref<48x2xi32, #tpu.memory_space<vmem>>, vector<48x2xi32>
    %c0_1 = arith.constant 0 : index
    %c0_2 = arith.constant 0 : index
    %1 = vector.load %arg1[%c0_1, %c0_2] : memref<80x65xf32, #tpu.memory_space<vmem>>, vector<80x65xf32>
    %2 = tpu.iota {dimensions = array<i32: 1>} : vector<48x80xi32>
    %3 = vector.extract_strided_slice %0 {offsets = [0, 0], sizes = [48, 1], strides = [1, 1]} : vector<48x2xi32> to vector<48x1xi32>
    %4 = vector.broadcast %3 : vector<48x1xi32> to vector<48x80xi32>
    %5 = arith.cmpi eq, %2, %4 : vector<48x80xi32>
    %6 = vector.extract_strided_slice %0 {offsets = [0, 1], sizes = [48, 1], strides = [1, 1]} : vector<48x2xi32> to vector<48x1xi32>
    %c50_i32 = arith.constant 50 : i32
    %7 = vector.broadcast %c50_i32 : i32 to vector<48x1xi32>
    %8 = arith.addi %6, %7 : vector<48x1xi32>
    %9 = vector.broadcast %8 : vector<48x1xi32> to vector<48x80xi32>
    %10 = arith.cmpi eq, %2, %9 : vector<48x80xi32>
    %11 = arith.ori %5, %10 : vector<48x80xi1>
    %12 = arith.extui %11 : vector<48x80xi1> to vector<48x80xi32>
    %13 = arith.sitofp %12 : vector<48x80xi32> to vector<48x80xf32>
    %cst = arith.constant dense<0.000000e+00> : vector<48x65xf32>
    %14 = tpu.matmul %13, %1, %cst {dimension_numbers = #tpu.dot_dimension_numbers<[1], [0], [0], [1], [0, 0, 1, 1], [], []>} : vector<48x80xf32>, vector<80x65xf32>, vector<48x65xf32> -> vector<48x65xf32>
    %15 = vector.extract_strided_slice %14 {offsets = [0, 0], sizes = [48, 32], strides = [1, 1]} : vector<48x65xf32> to vector<48x32xf32>
    %16 = vector.extract_strided_slice %14 {offsets = [0, 32], sizes = [48, 32], strides = [1, 1]} : vector<48x65xf32> to vector<48x32xf32>
    %17 = vector.extract_strided_slice %14 {offsets = [0, 64], sizes = [48, 1], strides = [1, 1]} : vector<48x65xf32> to vector<48x1xf32>
    %cst_3 = arith.constant 0.000000e+00 : f32
    %18 = vector.broadcast %cst_3 : f32 to vector<48x1xf32>
    %19 = arith.subf %18, %17 : vector<48x1xf32>
    %20 = math.exp %19 : vector<48x1xf32>
    %cst_4 = arith.constant 1.000000e+00 : f32
    %21 = vector.broadcast %cst_4 : f32 to vector<48x1xf32>
    %22 = arith.addf %21, %20 : vector<48x1xf32>
    %23 = tpu.reciprocal %22 {approx = true} : vector<48x1xf32> -> vector<48x1xf32>
    %24 = vector.broadcast %23 : vector<48x1xf32> to vector<48x32xf32>
    %25 = arith.mulf %24, %15 : vector<48x32xf32>
    %cst_5 = arith.constant 1.000000e+00 : f32
    %26 = vector.broadcast %cst_5 : f32 to vector<48x1xf32>
    %27 = arith.subf %26, %23 : vector<48x1xf32>
    %28 = vector.broadcast %27 : vector<48x1xf32> to vector<48x32xf32>
    %29 = arith.mulf %28, %16 : vector<48x32xf32>
    %30 = arith.addf %25, %29 : vector<48x32xf32>
    %31 = vector.extract_strided_slice %30 {offsets = [0, 0], sizes = [8, 32], strides = [1, 1]} : vector<48x32xf32> to vector<8x32xf32>
    %32 = vector.extract_strided_slice %30 {offsets = [8, 0], sizes = [40, 32], strides = [1, 1]} : vector<48x32xf32> to vector<40x32xf32>
    %33 = tpu.concatenate %31, %31, %31, %31, %31 in 0 : vector<8x32xf32>, vector<8x32xf32>, vector<8x32xf32>, vector<8x32xf32>, vector<8x32xf32> -> vector<40x32xf32>
    %34 = arith.mulf %33, %32 : vector<40x32xf32>
    %cst_6 = arith.constant dense<0.000000e+00> : vector<40xf32>
    %35 = vector.multi_reduction <add>, %34, %cst_6 [1] : vector<40x32xf32> to vector<40xf32>
    %36 = vector.shape_cast %35 : vector<40xf32> to vector<40x1xf32>
    %cst_7 = arith.constant -1.000000e+01 : f32
    %cst_8 = arith.constant 1.000000e+01 : f32
    %37 = vector.broadcast %cst_7 : f32 to vector<40x1xf32>
    %38 = arith.maximumf %37, %36 : vector<40x1xf32>
    %39 = vector.broadcast %cst_8 : f32 to vector<40x1xf32>
    %40 = arith.minimumf %39, %38 : vector<40x1xf32>
    %41 = tpu.iota {dimensions = array<i32: 0>} : vector<40x1xi32>
    %c8_i32 = arith.constant 8 : i32
    %42 = vector.broadcast %c8_i32 : i32 to vector<40x1xi32>
    %43 = arith.cmpi slt, %41, %42 : vector<40x1xi32>
    %cst_9 = arith.constant 0.000000e+00 : f32
    %44 = vector.broadcast %cst_9 : f32 to vector<40x1xf32>
    %45 = arith.subf %44, %40 : vector<40x1xf32>
    %46 = arith.select %43, %45, %40 : vector<40x1xi1>, vector<40x1xf32>
    %47 = math.exp %46 : vector<40x1xf32>
    %cst_10 = arith.constant 1.000000e+00 : f32
    %48 = vector.broadcast %cst_10 : f32 to vector<40x1xf32>
    %49 = arith.addf %48, %47 : vector<40x1xf32>
    %50 = math.log %49 : vector<40x1xf32>
    %cst_11 = arith.constant dense<0.000000e+00> : vector<1xf32>
    %51 = vector.multi_reduction <add>, %50, %cst_11 [0] : vector<40x1xf32> to vector<1xf32>
    %52 = vector.shape_cast %51 : vector<1xf32> to vector<1x1xf32>
    %cst_12 = arith.constant 1.250000e-01 : f32
    %53 = vector.broadcast %cst_12 : f32 to vector<1x1xf32>
    %54 = arith.mulf %52, %53 : vector<1x1xf32>
    %c0_13 = arith.constant 0 : index
    %c0_14 = arith.constant 0 : index
    %55 = vector.load %arg2[%c0_13, %c0_14] : memref<1x1xf32, #tpu.memory_space<vmem>>, vector<1x1xf32>
    tpu.vector_store %arg2[%c0_13, %c0_14], %54 {strides = array<i32>} : memref<1x1xf32, #tpu.memory_space<vmem>>, vector<1x1xf32>,
    return
  }
}

</mosaic_0001>

<bundles_post_ra>
// kernel: tpu_custom_call.1
= control target key start
LH: loop header
LB: loop body
LE: loop exit
PB: predicated region body
PF: predicated region fallthrough
CT: control target
= control target key end

     0   :  { %v631_v2 = vmov 0   ;;  %s753_s0 = inlined_call_operand.vmem [shape: s32[48,2], index: 0, kind: input, shape index: {}]   ;;  %s754_s1 = inlined_call_operand.vmem [shape: f32[80,65], index: 1, kind: input, shape index: {}]   ;;  %s755_s2 = inlined_call_operand.hbm [shape: f32[1,1], index: 2, kind: output, shape index: {}]  }
   0x1   :  { %v13_v0 = vld [vmem:[%s753_s0 + $0x8] sm:$0xff]  ;;  %v12_v1 = vld [vmem:[%s753_s0] sm:$0xff]  ;;  %558 = vset.pattern.permute.xlu1 %v631_v2  ;;  %556 = vset.pattern.permute.xlu0 %v631_v2  ;;  %v20_v5 = vld [vmem:[%s754_s1 + $0x10] sm:$0xff] }
   0x2   :  { %34 = vperm.xlu1 %558, %v13_v0   ;;  %31 = vperm.xlu0 %556, %v12_v1   ;;  %v18_v3 = vld [vmem:[%s754_s1] sm:$0xff]  ;;  %v19_v4 = vld [vmem:[%s754_s1 + $0x8] sm:$0xff]  ;;  %v55_v6 = vadd.s32 50, %v13_v0  ;;  %v54_v7 = vadd.s32 50, %v12_v1  ;;  %v21_v9 = vld [vmem:[%s754_s1 + $0x18] sm:$0xff] }
   0x3   :  { %v520_v8 = vpack.c.bf16 %v19_v4, %v18_v3  ;;  %v14_v10 = vld [vmem:[%s753_s0 + $0x10] sm:$0xff]  ;;  %v524_v11 = vpack.c.bf16 %v21_v9, %v20_v5 }
   0x5   :  { %521 = vmatprep.subr.bf16.mxu0 %v520_v8  ;;  %540 = vmatprep.subr.bf16.mxu1 %v520_v8 }
   0x6   :  { %7 = vsyncpa [#allocation3], 0  ;;  %v632_v12 = vmov 1   ;;  %v22_v13 = vld [vmem:[%s754_s1 + $0x20] sm:$0xff]  ;;  %v23_v14 = vld [vmem:[%s754_s1 + $0x28] sm:$0xff]  ;;  %v56_v15 = vadd.s32 50, %v14_v10  ;;  %523 = vmatpush3.bf16.msra.mxu0 %v520_v8  ;;  %545 = vmatpush3.bf16.msra.mxu1 %v520_v8  ;;  %v28_v29 = vlaneseq }
   0x7   :  { %559 = vset.pattern.permute.xlu1 %v632_v12  ;;  %557 = vset.pattern.permute.xlu0 %v632_v12  ;;  %v15_v16 = vld [vmem:[%s753_s0 + $0x18] sm:$0xff]  ;;  %v528_v17 = vpack.c.bf16 %v23_v14, %v22_v13  ;;  %v24_v18 = vld [vmem:[%s754_s1 + $0x30] sm:$0xff]  ;;  %v16_v21 = vld [vmem:[%s753_s0 + $0x20] sm:$0xff]  ;;  %vm102_vm5 = vcmask 654336   ;;  %v633_v35 = vmov 0.0   ;;  %v634_v50 = vmov 64  }
   0x8   :  { %64 = vperm.xlu1 %559, %v55_v6   ;;  %61 = vperm.xlu0 %557, %v54_v7   ;;  %v25_v19 = vld [vmem:[%s754_s1 + $0x38] sm:$0xff]  ;;  %v57_v20 = vadd.s32 50, %v15_v16  ;;  %v26_v23 = vld [vmem:[%s754_s1 + $0x40] sm:$0xff]  ;;  %v27_v24 = vld [vmem:[%s754_s1 + $0x48] sm:$0xff]  ;;  %v58_v25 = vadd.s32 50, %v16_v21  ;;  %v29_v32 = vand.u32 127, %v28_v29 }
   0x9   :  { %525 = vmatprep.subr.bf16.mxu0 %v524_v11  ;;  %541 = vmatprep.subr.bf16.mxu1 %v524_v11  ;;  %v532_v22 = vpack.c.bf16 %v25_v19, %v24_v18  ;;  %v17_v26 = vld [vmem:[%s753_s0 + $0x28] sm:$0xff]  ;;  %v536_v27 = vpack.c.bf16 %v27_v24, %v26_v23  ;;  %s635_s0 = smov 96   ;;  %s636_s1 = smov [#allocation2]  }
   0xa   :  { %527 = vmatpush3.bf16.msra.mxu0 %v524_v11  ;;  %546 = vmatpush3.bf16.msra.mxu1 %v524_v11  ;;  %v59_v28 = vadd.s32 50, %v17_v26  ;;  %s450_s13 = sshll.u32 %s636_s1, 4  ;;  %s451_s13 = int_to_ptr.vmem [resolvable:$true] %s450_s13 }
   0xb   :  { %529 = vmatprep.subr.bf16.mxu0 %v528_v17  ;;  %542 = vmatprep.subr.bf16.mxu1 %v528_v17  ;;  %s607_s14 = scalar_lea.vmem %s451_s13, 16  ;;  %s611_s15 = scalar_lea.vmem %s451_s13, 32 }
   0xc   :  { %560 = vset.pattern.permute.xlu1 %v631_v2  ;;  %67 = vperm.xlu0 %557, %v56_v15   ;;  %p608_p0 = scmp.ne.s32.totalorder %s451_s13, %s607_s14  ;;  %p612_p1 = scmp.lt.s32.totalorder %s451_s13, %s451_s13 }
   0xd   :  { %37 = vperm.xlu1 %560, %v14_v10   ;;  %p613_p2 = scmp.lt.s32.totalorder %s611_s15, %s607_s14 }
   0xe   :  { %531 = vmatpush3.bf16.msra.mxu0 %v528_v17  ;;  %547 = vmatpush3.bf16.msra.mxu1 %v528_v17 }
   0xf   :  { %533 = vmatprep.subr.bf16.mxu0 %v532_v22  ;;  %543 = vmatprep.subr.bf16.mxu1 %v532_v22  ;;  %p614_p3 = por %p613_p2, %p612_p1 }
  0x10   :  { %70 = vperm.xlu0 %557, %v57_v20  }
  0x11   :  { %40 = vperm.xlu1 %560, %v15_v16   ;;  %p615_p4 = pnand %p614_p3, %p608_p0 }
  0x12   :  { %535 = vmatpush3.bf16.msra.mxu0 %v532_v22  ;;  %548 = vmatpush3.bf16.msra.mxu1 %v532_v22 }
  0x13   :  { %537 = vmatprep.subr.bf16.mxu0 %v536_v27  ;;  %544 = vmatprep.subr.bf16.mxu1 %v536_v27 }
  0x14   :  { %73 = vperm.xlu0 %557, %v58_v25  }
  0x15   :  { %43 = vperm.xlu1 %560, %v16_v21  }
  0x16   :  { %539 = vmatpush3.bf16.msra.mxu0 %v536_v27  ;;  %549 = vmatpush3.bf16.msra.mxu1 %v536_v27 }
  0x18   :  { %76 = vperm.xlu0 %557, %v59_v28  }
  0x19   :  { %46 = vperm.xlu1 %560, %v17_v26  }
  0x1c   :  { %561 = vset.pattern.permute.xlu0 %v634_v50 }
  0x1d   :  { %562 = vset.pattern.permute.xlu1 %v634_v50 }
  0x81   :  { %v35_v30 = vpop.permute.xlu1 %34  ;;  %v32_v31 = vpop.permute.xlu0 %31 }
  0x82   :  { %vm49_vm0 = vcmp.eq.s32.totalorder %v29_v32, %v35_v30  ;;  %vm48_vm3 = vcmp.eq.s32.totalorder %v29_v32, %v32_v31 }
  0x87   :  { %v65_v33 = vpop.permute.xlu1 %64  ;;  %v62_v34 = vpop.permute.xlu0 %61 }
  0x88   :  { %vm79_vm1 = vcmp.eq.s32.totalorder %v29_v32, %v65_v33  ;;  %vm78_vm2 = vcmp.eq.s32.totalorder %v29_v32, %v62_v34 }
  0x89   :  { %vm85_vm4 = vmor %vm49_vm0, %vm79_vm1 }
  0x8a   :  { %v459_v36 = vsel %vm85_vm4, 1.0, %v633_v35  ;;  %vm84_vm6 = vmor %vm48_vm3, %vm78_vm2  ;;  %vm359_vm3 = vcmask 261120   ;;  %vm442_vm4 = vcmask 0  }
  0x8b   :  { %v458_v37 = vsel %vm84_vm6, 1.0, %v633_v35  ;;  %v68_v38 = vpop.permute.xlu0 %67 }
  0x8c   :  { %511 = vmatprep.mubr.msk.f32.mxu0 %vm102_vm5, %v458_v37  ;;  %vm80_vm7 = vcmp.eq.s32.totalorder %v29_v32, %v68_v38  ;;  %v38_v39 = vpop.permute.xlu1 %37 }
  0x8d   :  { %vm50_vm8 = vcmp.eq.s32.totalorder %v29_v32, %v38_v39  ;;  %512 = vmatmul.mubr.msk.f32.vlgmr.msra.gmra.mrb[0].mxu0 %vm102_vm5, %v459_v36 }
  0x8e   :  { %vm86_vm9 = vmor %vm50_vm8, %vm80_vm7 }
  0x8f   :  { %v71_v40 = vpop.permute.xlu0 %70  ;;  %v460_v41 = vsel %vm86_vm9, 1.0, %v633_v35 }
  0x90   :  { %vm81_vm10 = vcmp.eq.s32.totalorder %v29_v32, %v71_v40  ;;  %v41_v42 = vpop.permute.xlu1 %40  ;;  %514 = vmatprep.mubr.msk.f32.mxu1 %vm102_vm5, %v460_v41 }
  0x91   :  { %vm51_vm11 = vcmp.eq.s32.totalorder %v29_v32, %v41_v42 }
  0x92   :  { %vm87_vm12 = vmor %vm51_vm11, %vm81_vm10 }
  0x93   :  { %v461_v43 = vsel %vm87_vm12, 1.0, %v633_v35  ;;  %v74_v44 = vpop.permute.xlu0 %73 }
  0x94   :  { %vm82_vm13 = vcmp.eq.s32.totalorder %v29_v32, %v74_v44  ;;  %v44_v45 = vpop.permute.xlu1 %43  ;;  %515 = vmatmul.mubr.msk.f32.vlgmr.msra.gmra.mrb[0].mxu1 %vm102_vm5, %v461_v43 }
  0x95   :  { %vm52_vm14 = vcmp.eq.s32.totalorder %v29_v32, %v44_v45 }
  0x96   :  { %vm88_vm15 = vmor %vm52_vm14, %vm82_vm13 }
  0x97   :  { %v462_v46 = vsel %vm88_vm15, 1.0, %v633_v35  ;;  %v77_v47 = vpop.permute.xlu0 %76 }
  0x98   :  { %vm83_vm0 = vcmp.eq.s32.totalorder %v29_v32, %v77_v47  ;;  %v47_v48 = vpop.permute.xlu1 %46  ;;  %517 = vmatprep.mubr.msk.f32.mxu1 %vm102_vm5, %v462_v46 }
  0x99   :  { %vm53_vm1 = vcmp.eq.s32.totalorder %v29_v32, %v47_v48 }
  0x9a   :  { %vm89_vm2 = vmor %vm53_vm1, %vm83_vm0 }
  0x9b   :  { %v463_v49 = vsel %vm89_vm2, 1.0, %v633_v35 }
  0x9c   :  { %518 = vmatmul.mubr.msk.f32.gmra.mrb[2].mxu1 %vm102_vm5, %v463_v49 }
 0x160   :  { %v706_v51 = vpop.f32.mrb[0].mxu0 }
 0x161   :  { %v217_v52 = vsub.f32 0.0, %v706_v51  ;;  %v709_v53 = vpop.f32.mrb[1].mxu0 }
 0x162   :  { %v216_v54 = vsub.f32 0.0, %v709_v53 }
 0x163   :  { %v224_v55 = vmul.f32 1.442695, %v217_v52 }
 0x164   :  { %v222_v56 = vmul.f32 1.442695, %v216_v54 }
 0x165   :  { %563 = vpow2.f32 %v224_v55 }
 0x166   :  { %565 = vpow2.f32 %v222_v56 }
 0x167   :  { %v712_v57 = vpop.f32.mrb[0].mxu1 }
 0x168   :  { %v219_v58 = vsub.f32 0.0, %v712_v57  ;;  %v715_v59 = vpop.f32.mrb[1].mxu1 }
 0x169   :  { %v218_v60 = vsub.f32 0.0, %v715_v59 }
 0x16a   :  { %v228_v61 = vmul.f32 1.442695, %v219_v58 }
 0x16b   :  { %v226_v62 = vmul.f32 1.442695, %v218_v60 }
 0x16c   :  { %567 = vpow2.f32 %v228_v61 }
 0x16d   :  { %569 = vpow2.f32 %v226_v62 }
 0x16f   :  { %v564_v63 = vpop.eup %563  ;;  %v718_v0 = vpop.f32.mrb[2].mxu1 }
 0x170   :  { %v566_v1 = vpop.eup %565  ;;  %v235_v2 = vadd.f32 1.0, %v564_v63  ;;  %v221_v3 = vsub.f32 0.0, %v718_v0  ;;  %v721_v4 = vpop.f32.mrb[3].mxu1 }
 0x171   :  { %v234_v5 = vadd.f32 1.0, %v566_v1  ;;  %v220_v6 = vsub.f32 0.0, %v721_v4 }
 0x172   :  { %571 = vrcp.f32 %v235_v2  ;;  %v232_v7 = vmul.f32 1.442695, %v221_v3 }
 0x173   :  { %573 = vrcp.f32 %v234_v5  ;;  %v230_v8 = vmul.f32 1.442695, %v220_v6 }
 0x174   :  { %575 = vpow2.f32 %v232_v7 }
 0x175   :  { %577 = vpow2.f32 %v230_v8 }
 0x176   :  { %v568_v9 = vpop.eup %567 }
 0x177   :  { %v570_v10 = vpop.eup %569  ;;  %v237_v11 = vadd.f32 1.0, %v568_v9 }
 0x178   :  { %v236_v12 = vadd.f32 1.0, %v570_v10 }
 0x17a   :  { %579 = vrcp.f32 %v236_v12 }
 0x17b   :  { %581 = vrcp.f32 %v237_v11 }
 0x17c   :  { %v572_v13 = vpop.eup %571 }
 0x17d   :  { %v574_v14 = vpop.eup %573  ;;  %v283_v15 = vsub.f32 1.0, %v572_v13 }
 0x17e   :  { %v576_v16 = vpop.eup %575  ;;  %v282_v17 = vsub.f32 1.0, %v574_v14 }
 0x17f   :  { %v578_v18 = vpop.eup %577  ;;  %v239_v19 = vadd.f32 1.0, %v576_v16  ;;  %295 = vperm.xlu0 %561, %v283_v15  }
 0x180   :  { %v238_v20 = vadd.f32 1.0, %v578_v18  ;;  %290 = vperm.xlu1 %562, %v282_v17  }
 0x181   :  { %583 = vrcp.f32 %v239_v19 }
 0x182   :  { %585 = vrcp.f32 %v238_v20 }
 0x184   :  { %v580_v21 = vpop.eup %579 }
 0x185   :  { %v284_v22 = vsub.f32 1.0, %v580_v21  ;;  %v582_v23 = vpop.eup %581 }
 0x186   :  { %v285_v24 = vsub.f32 1.0, %v582_v23 }
 0x187   :  { %300 = vperm.xlu1 %562, %v284_v22  }
 0x18b   :  { %v584_v25 = vpop.eup %583  ;;  %305 = vperm.xlu1 %562, %v285_v24  }
 0x18c   :  { %v586_v26 = vpop.eup %585  ;;  %v287_v27 = vsub.f32 1.0, %v584_v25 }
 0x18d   :  { %v286_v28 = vsub.f32 1.0, %v586_v26 }
 0x18f   :  { %315 = vperm.xlu1 %562, %v287_v27   ;;  %310 = vperm.xlu0 %561, %v286_v28  }
 0x193   :  { %253 = vperm.xlu1 %562, %v572_v13   ;;  %248 = vperm.xlu0 %561, %v574_v14  }
 0x197   :  { %263 = vperm.xlu1 %562, %v582_v23   ;;  %258 = vperm.xlu0 %561, %v580_v21  }
 0x19b   :  { %273 = vperm.xlu1 %562, %v584_v25   ;;  %268 = vperm.xlu0 %561, %v586_v26  }
 0x1fe   :  { %v296_v29 = vpop.permute.xlu0 %295 }
 0x1ff   :  { %v319_v30 = vmul.f32 %v706_v51, %v296_v29  ;;  %v291_v31 = vpop.permute.xlu1 %290 }
 0x200   :  { %v318_v32 = vmul.f32 %v291_v31, %v709_v53 }
 0x201   :  { %332 = vrot.lane.b32.xlu1 %v319_v30, %s635_s0 }
 0x202   :  { %330 = vrot.lane.b32.xlu0 %v318_v32, %s635_s0 }
 0x206   :  { %v301_v33 = vpop.permute.xlu1 %300 }
 0x207   :  { %v320_v34 = vmul.f32 %v301_v33, %v715_v59 }
 0x209   :  { %334 = vrot.lane.b32.xlu0 %v320_v34, %s635_s0 }
 0x20a   :  { %v306_v35 = vpop.permute.xlu1 %305 }
 0x20b   :  { %v321_v36 = vmul.f32 %v712_v57, %v306_v35 }
 0x20d   :  { %336 = vrot.lane.b32.xlu1 %v321_v36, %s635_s0 }
 0x20e   :  { %v316_v37 = vpop.permute.xlu1 %315  ;;  %v311_v38 = vpop.permute.xlu0 %310 }
 0x20f   :  { %v323_v39 = vmul.f32 %v718_v0, %v316_v37  ;;  %v322_v40 = vmul.f32 %v311_v38, %v721_v4 }
 0x211   :  { %340 = vrot.lane.b32.xlu1 %v323_v39, %s635_s0  ;;  %338 = vrot.lane.b32.xlu0 %v322_v40, %s635_s0 }
 0x212   :  { %v254_v41 = vpop.permute.xlu1 %253  ;;  %v249_v42 = vpop.permute.xlu0 %248 }
 0x213   :  { %v277_v47 = vmul.f32 %v706_v51, %v254_v41  ;;  %v276_v48 = vmul.f32 %v249_v42, %v709_v53 }
 0x216   :  { %v264_v43 = vpop.permute.xlu1 %263  ;;  %v259_v44 = vpop.permute.xlu0 %258 }
 0x217   :  { %v278_v58 = vmul.f32 %v259_v44, %v715_v59  ;;  %v279_v62 = vmul.f32 %v712_v57, %v264_v43 }
 0x21a   :  { %v274_v45 = vpop.permute.xlu1 %273  ;;  %v269_v46 = vpop.permute.xlu0 %268 }
 0x21b   :  { %v281_v2 = vmul.f32 %v718_v0, %v274_v45  ;;  %v280_v3 = vmul.f32 %v269_v46, %v721_v4 }
 0x273   :  { %v333_v49 = vpop.permute.xlu1 %332 }
 0x274   :  { %v349_v50 = vadd.f32 %v333_v49, %v277_v47  ;;  %v331_v52 = vpop.permute.xlu0 %330 }
 0x275   :  { %v348_v54 = vadd.f32 %v331_v52, %v276_v48 }
 0x277   :  { %v354_v55 = vmul.f32 %v349_v50, %v348_v54 }
 0x279   :  { %v360_v56 = vsel %vm359_vm3, %v354_v55, 0.0 }
 0x27a   :  { %361 = vadd.xlane.f32.xlu0 %v360_v56 }
 0x27b   :  { %v335_v60 = vpop.permute.xlu0 %334 }
 0x27c   :  { %v350_v61 = vadd.f32 %v335_v60, %v278_v58 }
 0x27e   :  { %v355_v63 = vmul.f32 %v350_v61, %v348_v54 }
 0x27f   :  { %v337_v1 = vpop.permute.xlu1 %336 }
 0x280   :  { %v351_v51 = vadd.f32 %v337_v1, %v279_v62  ;;  %v363_v53 = vsel %vm359_vm3, %v355_v63, 0.0 }
 0x281   :  { %364 = vadd.xlane.f32.xlu1 %v363_v53 }
 0x282   :  { %v356_v5 = vmul.f32 %v351_v51, %v348_v54 }
 0x283   :  { %v341_v6 = vpop.permute.xlu1 %340  ;;  %v339_v7 = vpop.permute.xlu0 %338 }
 0x284   :  { %v353_v8 = vadd.f32 %v341_v6, %v281_v2  ;;  %v352_v59 = vadd.f32 %v339_v7, %v280_v3  ;;  %v366_v9 = vsel %vm359_vm3, %v356_v5, 0.0 }
 0x285   :  { %367 = vadd.xlane.f32.xlu0 %v366_v9 }
 0x286   :  { %v358_v10 = vmul.f32 %v353_v8, %v348_v54  ;;  %v357_v57 = vmul.f32 %v352_v59, %v348_v54 }
 0x288   :  { %v372_v11 = vsel %vm359_vm3, %v358_v10, 0.0  ;;  %v369_v12 = vsel %vm359_vm3, %v357_v57, 0.0 }
 0x289   :  { %373 = vadd.xlane.f32.xlu1 %v372_v11  ;;  %370 = vadd.xlane.f32.xlu0 %v369_v12 }
 0x307   :  { %v362_v13 = vpop.xlane.xlu0 %361 }
 0x308   :  { %v470_v0 = vclamps-f32 %v362_v13, 10.0 }
 0x30a   :  { %v396_v14 = vsub.f32 0.0, %v470_v0 }
 0x30c   :  { %v406_v4 = vmul.f32 1.442695, %v396_v14 }
 0x30e   :  { %v365_v15 = vpop.xlane.xlu1 %364  ;;  %587 = vpow2.f32 %v406_v4 }
 0x30f   :  { %v471_v16 = vclamps-f32 %v365_v15, 10.0 }
 0x311   :  { %v408_v17 = vmul.f32 1.442695, %v471_v16 }
 0x312   :  { %v368_v18 = vpop.xlane.xlu0 %367 }
 0x313   :  { %589 = vpow2.f32 %v408_v17  ;;  %v472_v19 = vclamps-f32 %v368_v18, 10.0 }
 0x315   :  { %v410_v20 = vmul.f32 1.442695, %v472_v19 }
 0x316   :  { %v374_v21 = vpop.xlane.xlu1 %373  ;;  %v371_v22 = vpop.xlane.xlu0 %370 }
 0x317   :  { %591 = vpow2.f32 %v410_v20  ;;  %v474_v23 = vclamps-f32 %v374_v21, 10.0  ;;  %v473_v24 = vclamps-f32 %v371_v22, 10.0 }
 0x318   :  { %v588_v27 = vpop.eup %587 }
 0x319   :  { %v414_v25 = vmul.f32 1.442695, %v474_v23  ;;  %v412_v26 = vmul.f32 1.442695, %v473_v24  ;;  %v416_v30 = vadd.f32 1.0, %v588_v27 }
 0x31b   :  { %593 = vpow2.f32 %v414_v25 }
 0x31c   :  { %595 = vpow2.f32 %v412_v26 }
 0x31d   :  { %v590_v28 = vpop.eup %589 }
 0x31e   :  { %v417_v29 = vadd.f32 1.0, %v590_v28 }
 0x320   :  { %597 = vlog2.f32 %v417_v29 }
 0x321   :  { %v592_v31 = vpop.eup %591  ;;  %599 = vlog2.f32 %v416_v30 }
 0x322   :  { %v418_v32 = vadd.f32 1.0, %v592_v31 }
 0x324   :  { %601 = vlog2.f32 %v418_v32 }
 0x325   :  { %v594_v33 = vpop.eup %593 }
 0x326   :  { %v596_v34 = vpop.eup %595  ;;  %v420_v35 = vadd.f32 1.0, %v594_v33 }
 0x327   :  { %v419_v36 = vadd.f32 1.0, %v596_v34 }
 0x328   :  { %603 = vlog2.f32 %v420_v35 }
 0x329   :  { %605 = vlog2.f32 %v419_v36 }
 0x32a   :  { %v598_v37 = vpop.eup %597 }
 0x32b   :  { %v600_v38 = vpop.eup %599  ;;  %v424_v40 = vmul.f32 0.6931472, %v598_v37 }
 0x32c   :  { %v422_v41 = vmul.f32 0.6931472, %v600_v38 }
 0x32e   :  { %v602_v39 = vpop.eup %601  ;;  %v431_v44 = vadd.f32 %v424_v40, %v422_v41 }
 0x32f   :  { %v426_v42 = vmul.f32 0.6931472, %v602_v39 }
 0x331   :  { %v432_v46 = vadd.f32 %v431_v44, %v426_v42 }
 0x332   :  { %v604_v43 = vpop.eup %603 }
 0x333   :  { %v606_v45 = vpop.eup %605  ;;  %v430_v48 = vmul.f32 0.6931472, %v604_v43 }
 0x334   :  { %v428_v47 = vmul.f32 0.6931472, %v606_v45 }
 0x336   :  { %v433_v49 = vadd.f32 %v432_v46, %v428_v47 }
 0x338   :  { %v434_v50 = vadd.f32 %v433_v49, %v430_v48 }
 0x33a   :  { %v435_v52 = vrot.slane %v434_v50, 4 }
 0x33c   :  { %v436_v54 = vadd.f32 %v435_v52, %v434_v50 }
 0x33e   :  { %v437_v55 = vrot.slane %v436_v54, 2 }
 0x340   :  { %v438_v56 = vadd.f32 %v437_v55, %v436_v54 }
 0x342   :  { %v439_v58 = vrot.slane %v438_v56, 1 }
 0x344   :  { %v440_v60 = vadd.f32 %v439_v58, %v438_v56 }
 0x346   :  { %v441_v61 = vmul.f32 0.125, %v440_v60 }
 0x348   :  { %443 = vst.msk [vmem:[#allocation2] sm:$0x1] %vm442_vm4, %v441_v61 }
 0x349   :  { %618 = shalt.err (!%p615_p4)
}
 0x34a   :  { %s619_s18 = scalar_lea.hbm %s755_s2, 16 }
 0x34b   :  { %p620_p5 = scmp.ne.s32.totalorder %s755_s2, %s619_s18  ;;  %p623_p6 = scmp.lt.u32.totalorder %s619_s18, %s755_s2 }
 0x34d   :  { %p625_p7 = pnand %p623_p6, %p620_p5 }
 0x34f   :  { %628 = shalt.err (!%p625_p7)
}
 0x350   :  { %453 = dma.vmem_to_hbm [thread:$0]  %s451_s13, 16, %s755_s2, [#allocation3]  }
 0x351   :  { %629 = dma.done.wait [#allocation3], 16  }
 0x352   :  { %630 = vsyncadd [#allocation3], 4294967280 }
 0x353   :  { %457 = vsyncpa [#allocation3], 1 }

</bundles_post_ra>
